<compile_context>
chip_gen: v6e
topology: v6e:2x2x1
jax: 0.10.0
libtpu: 0.0.40
codegen_flags: <defaults>
</compile_context>

<pallas_src>
import jax
import jax.numpy as jnp
from jax.experimental import pallas as pl
from jax.experimental.pallas import tpu as pltpu

HIDDEN = 100        # fixed by the module definition
HIDDEN_PAD = 128    # hidden dim padded to a full lane width
OUT_PAD = 128       # lane-dense output block width (column 0 holds the result)


def _round_up(n, m):
    return (n + m - 1) // m * m


# ---------------------------------------------------------------------------
# Kernels
# ---------------------------------------------------------------------------
def _mlp_fused_kernel(x_ref, w1_ref, w2_ref, o_ref):
    """Single-K-tile path: whole feature dim resident; no scratch, no branches."""
    # fc1 on the MXU with an f32 accumulator dtype.
    h = jnp.dot(x_ref[...], w1_ref[...], preferred_element_type=jnp.float32)
    h = jnp.maximum(h, 0.0)                                   # ReLU       (TB, 128)
    # fc2 as VPU multiply + XLU lane reduction (N=1 matmul is wasteful on MXU).
    y = jnp.sum(h * w2_ref[...], axis=-1, keepdims=True)      # (TB, 1)
    s = jax.nn.sigmoid(y)                                     # EUP exp path
    # Lane-dense (unmasked) store across the padded output block.
    o_ref[...] = jnp.broadcast_to(s, o_ref.shape).astype(o_ref.dtype)


def _mlp_ktiled_kernel(x_ref, w1_ref, w2_ref, o_ref, acc_ref):
    """General path: grid = (batch_tiles, k_tiles); K axis last / "arbitrary"."""
    k = pl.program_id(1)

    @pl.when(k == 0)
    def _init():
        acc_ref[...] = jnp.zeros_like(acc_ref)

    # fc1 partial product: (TB, TK) @ (TK, 128) accumulated in f32 on the MXU.
    acc_ref[...] += jnp.dot(
        x_ref[...], w1_ref[...], preferred_element_type=jnp.float32
    )

    @pl.when(k == pl.num_programs(1) - 1)
    def _finalize():
        h = jnp.maximum(acc_ref[...], 0.0)                    # ReLU       (TB, 128)
        y = jnp.sum(h * w2_ref[...], axis=-1, keepdims=True)  # (TB, 1)
        s = jax.nn.sigmoid(y)                                 # EUP exp path
        o_ref[...] = jnp.broadcast_to(s, o_ref.shape).astype(o_ref.dtype)


# ---------------------------------------------------------------------------
# Wrapper
# ---------------------------------------------------------------------------
def mymodel_forward(x, w1, w2, *, tb=512, tk_max=512):
    """x: (B, F) f32, w1: (F, 100) f32, w2: (100, 1) f32 -> (B, 1) f32."""
    B, F = x.shape
    assert w1.shape == (F, HIDDEN)
    assert w2.shape == (HIDDEN, 1)
    assert tb % 8 == 0 and tk_max % 128 == 0

    # Pad hidden 100 -> 128 with zeros (numerically exact).
    w1p = jnp.pad(w1, ((0, 0), (0, HIDDEN_PAD - HIDDEN)))
    w2row = jnp.pad(w2.reshape(1, HIDDEN), ((0, 0), (0, HIDDEN_PAD - HIDDEN)))

    # Batch tile: multiple of 8, capped at `tb`; pad B with zero rows (sliced off).
    TB = min(tb, _round_up(B, 8))
    B_pad = _round_up(B, TB)

    single_k = F <= tk_max
    if single_k:
        TK, F_pad = F, F
    else:
        TK = tk_max
        F_pad = _round_up(F, TK)

    xp = x
    if B_pad != B or F_pad != F:
        xp = jnp.pad(x, ((0, B_pad - B), (0, F_pad - F)))
    if F_pad != F:
        w1p = jnp.pad(w1p, ((0, F_pad - F), (0, 0)))

    cost = pl.CostEstimate(
        flops=int(2 * B_pad * F_pad * HIDDEN_PAD + 2 * B_pad * HIDDEN_PAD),
        transcendentals=int(B_pad),
        bytes_accessed=int(
            4 * (B_pad * F_pad + F_pad * HIDDEN_PAD + HIDDEN_PAD + B_pad * OUT_PAD)
        ),
    )

    if single_k:
        out = pl.pallas_call(
            _mlp_fused_kernel,
            out_shape=jax.ShapeDtypeStruct((B_pad, OUT_PAD), jnp.float32),
            grid_spec=pltpu.PrefetchScalarGridSpec(
                num_scalar_prefetch=0,
                grid=(B_pad // TB,),
                in_specs=[
                    pl.BlockSpec((TB, F_pad), lambda i: (i, 0)),          # x tile
                    pl.BlockSpec((F_pad, HIDDEN_PAD), lambda i: (0, 0)),  # w1 (resident)
                    pl.BlockSpec((1, HIDDEN_PAD), lambda i: (0, 0)),      # w2 (resident)
                ],
                out_specs=pl.BlockSpec((TB, OUT_PAD), lambda i: (i, 0)),
            ),
            compiler_params=pltpu.CompilerParams(
                dimension_semantics=("parallel",),
            ),
            cost_estimate=cost,
        )(xp, w1p, w2row)
    else:
        out = pl.pallas_call(
            _mlp_ktiled_kernel,
            out_shape=jax.ShapeDtypeStruct((B_pad, OUT_PAD), jnp.float32),
            grid_spec=pltpu.PrefetchScalarGridSpec(
                num_scalar_prefetch=0,
                grid=(B_pad // TB, F_pad // TK),
                in_specs=[
                    pl.BlockSpec((TB, TK), lambda i, k: (i, k)),          # x tile
                    pl.BlockSpec((TK, HIDDEN_PAD), lambda i, k: (k, 0)),  # w1 tile
                    pl.BlockSpec((1, HIDDEN_PAD), lambda i, k: (0, 0)),   # w2 (resident)
                ],
                out_specs=pl.BlockSpec((TB, OUT_PAD), lambda i, k: (i, 0)),
                scratch_shapes=[pltpu.VMEM((TB, HIDDEN_PAD), jnp.float32)],
            ),
            compiler_params=pltpu.CompilerParams(
                dimension_semantics=("parallel", "arbitrary"),
            ),
            cost_estimate=cost,
        )(xp, w1p, w2row)

    # Un-pad: keep real batch rows and the single real output column.
    return out[:B, :1]


def reference_forward(x, w1, w2):
    # Mathematically identical to sigmoid(relu(x @ w1) @ w2) (the PyTorch forward);
    # fc2 written as multiply+sum so both sides use exact f32 for that step.
    h = jnp.maximum(jnp.dot(x, w1), 0.0)
    y = jnp.sum(h * w2.reshape(1, -1), axis=-1, keepdims=True)
    return jax.nn.sigmoid(y)


if __name__ == "__main__":
    key = jax.random.PRNGKey(0)
    k_x, k_w1, k_w2, k_x2, k_w1b = jax.random.split(key, 5)

    # ---- Test 1: fused single-K-tile path (the common small-feature case) ----
    B, F = 16, 32
    x = jax.random.normal(k_x, (B, F), dtype=jnp.float32)
    w1 = jax.random.normal(k_w1, (F, HIDDEN), dtype=jnp.float32) * (1.0 / jnp.sqrt(F))
    w2 = jax.random.normal(k_w2, (HIDDEN, 1), dtype=jnp.float32) * (1.0 / jnp.sqrt(HIDDEN))

    # tb=8 forces 2 batch tiles so the grid/pipelining path is exercised even at
    # this small demo size (production sizes use the default tb=512).
    out = jax.block_until_ready(mymodel_forward(x, w1, w2, tb=8))
    ref = reference_forward(x, w1, w2)
    assert out.shape == (B, 1)
    assert jnp.allclose(out, ref, atol=1e-4, rtol=1e-4), "fused-path mismatch vs reference"

    # ---- Test 2: K-tiled accumulator path (large feature count) --------------
    F2 = 256
    x2 = jax.random.normal(k_x2, (B, F2), dtype=jnp.float32)
    w1b = jax.random.normal(k_w1b, (F2, HIDDEN), dtype=jnp.float32) * (1.0 / jnp.sqrt(F2))

    out2 = jax.block_until_ready(mymodel_forward(x2, w1b, w2, tb=8, tk_max=128))
    ref2 = reference_forward(x2, w1b, w2)
    assert out2.shape == (B, 1)
    assert jnp.allclose(out2, ref2, atol=1e-4, rtol=1e-4), "k-tiled-path mismatch vs reference"

    print("KERNEL_OK")
</pallas_src>

<mosaic_0001>
module attributes {stable_mosaic.version = 11 : i64} {
  func.func @_mlp_fused_kernel(%arg0: i32, %arg1: memref<8x32xf32, #tpu.memory_space<vmem>>, %arg2: memref<32x128xf32, #tpu.memory_space<vmem>>, %arg3: memref<1x128xf32, #tpu.memory_space<vmem>>, %arg4: memref<8x128xf32, #tpu.memory_space<vmem>>) attributes {dimension_semantics = [#tpu.dimension_semantics<parallel>], iteration_bounds = array<i64: 2>, scalar_prefetch = 0 : i64, scratch_operands = 0 : i64, tpu.core_type = #tpu.core_type<tc>, window_params = [{transform_indices = @transform_0, window_bounds = array<i64: 8, 32>}, {pipeline_mode = #tpu.pipeline_mode<synchronous>, transform_indices = @transform_1, window_bounds = array<i64: 32, 128>}, {pipeline_mode = #tpu.pipeline_mode<synchronous>, transform_indices = @transform_2, window_bounds = array<i64: 1, 128>}, {transform_indices = @transform_3, window_bounds = array<i64: 8, 128>}]} {
    %c0 = arith.constant 0 : index
    %c0_0 = arith.constant 0 : index
    %0 = vector.load %arg1[%c0, %c0_0] : memref<8x32xf32, #tpu.memory_space<vmem>>, vector<8x32xf32>
    %c0_1 = arith.constant 0 : index
    %c0_2 = arith.constant 0 : index
    %1 = vector.load %arg2[%c0_1, %c0_2] : memref<32x128xf32, #tpu.memory_space<vmem>>, vector<32x128xf32>
    %cst = arith.constant dense<0.000000e+00> : vector<8x128xf32>
    %2 = tpu.matmul %0, %1, %cst {dimension_numbers = #tpu.dot_dimension_numbers<[1], [0], [0], [1], [0, 0, 1, 1], [], []>} : vector<8x32xf32>, vector<32x128xf32>, vector<8x128xf32> -> vector<8x128xf32>
    %cst_3 = arith.constant 0.000000e+00 : f32
    %3 = vector.broadcast %cst_3 : f32 to vector<8x128xf32>
    %4 = arith.maximumf %2, %3 : vector<8x128xf32>
    %c0_4 = arith.constant 0 : index
    %c0_5 = arith.constant 0 : index
    %5 = vector.load %arg3[%c0_4, %c0_5] : memref<1x128xf32, #tpu.memory_space<vmem>>, vector<1x128xf32>
    %6 = vector.broadcast %5 : vector<1x128xf32> to vector<8x128xf32>
    %7 = arith.mulf %4, %6 : vector<8x128xf32>
    %cst_6 = arith.constant dense<0.000000e+00> : vector<8xf32>
    %8 = vector.multi_reduction <add>, %7, %cst_6 [1] : vector<8x128xf32> to vector<8xf32>
    %9 = vector.shape_cast %8 : vector<8xf32> to vector<8x1xf32>
    %10 = arith.negf %9 : vector<8x1xf32>
    %11 = math.exp %10 : vector<8x1xf32>
    %cst_7 = arith.constant 1.000000e+00 : f32
    %12 = vector.broadcast %cst_7 : f32 to vector<8x1xf32>
    %13 = arith.addf %12, %11 : vector<8x1xf32>
    %14 = arith.divf %12, %13 : vector<8x1xf32>
    %15 = vector.shape_cast %14 : vector<8x1xf32> to vector<8x1xf32>
    %16 = vector.broadcast %15 : vector<8x1xf32> to vector<8x128xf32>
    %c0_8 = arith.constant 0 : index
    %c0_9 = arith.constant 0 : index
    %17 = vector.load %arg4[%c0_8, %c0_9] : memref<8x128xf32, #tpu.memory_space<vmem>>, vector<8x128xf32>
    tpu.vector_store %arg4[%c0_8, %c0_9], %16 {strides = array<i32>} : memref<8x128xf32, #tpu.memory_space<vmem>>, vector<8x128xf32>,
    return
  }
  func.func @transform_0(%arg0: i32) -> (i32, i32) {
    %c0_i32 = arith.constant 0 : i32
    %c0_i32_0 = arith.constant 0 : i32
    return %arg0, %c0_i32 : i32, i32
  }
  func.func @transform_1(%arg0: i32) -> (i32, i32) {
    %c0_i32 = arith.constant 0 : i32
    %c0_i32_0 = arith.constant 0 : i32
    %c0_i32_1 = arith.constant 0 : i32
    return %c0_i32, %c0_i32_0 : i32, i32
  }
  func.func @transform_2(%arg0: i32) -> (i32, i32) {
    %c0_i32 = arith.constant 0 : i32
    %c0_i32_0 = arith.constant 0 : i32
    %c0_i32_1 = arith.constant 0 : i32
    return %c0_i32, %c0_i32_0 : i32, i32
  }
  func.func @transform_3(%arg0: i32) -> (i32, i32) {
    %c0_i32 = arith.constant 0 : i32
    %c0_i32_0 = arith.constant 0 : i32
    return %arg0, %c0_i32 : i32, i32
  }
}

</mosaic_0001>

<bundles_post_ra>
// kernel: tpu_custom_call.1
= control target key start
LH: loop header
LB: loop body
LE: loop exit
PB: predicated region body
PF: predicated region fallthrough
CT: control target
= control target key end

     0   :  { %8 = vsyncpa [#allocation3], 0  ;;  %s808_s0 = inlined_call_operand.hbm [shape: f32[16,32], index: 0, kind: input, shape index: {}]   ;;  %s809_s1 = inlined_call_operand.hbm [shape: f32[32,128], index: 1, kind: input, shape index: {}]   ;;  %s810_s2 = inlined_call_operand.vmem [shape: f32[1,128], index: 2, kind: input, shape index: {}]   ;;  %s811_s3 = inlined_call_operand.hbm [shape: f32[16,128], index: 3, kind: output, shape index: {}]  }
   0x1   :  { %10 = vsyncpa [#allocation3 + $0x1], 0 }
   0x2   :  { %11 = vsyncpa [#allocation6], 0 }
   0x3   :  { %12 = vsyncpa [#allocation4], 0 }
   0x4   :  { %14 = vsyncpa [#allocation4 + $0x1], 0  ;;  %s641_s12 = smov 0   ;;  %s643_s13 = smov 0  }
   0x5   :  { %s645_s14 = smov 0   ;;  %s647_s15 = smov 0  }
   0x6 LB: > { %s662_s16 = sadd.s32 4294967295, %s612_s15   ;;  %s392_s17 = sadd.s32 4294967294, %s612_s15   ;;  %s612_s15 = sphi %s647_s15, %s833_s15   ;;  %s608_s14 = sphi %s645_s14, %s832_s14   ;;  %s604_s13 = sphi %s643_s13, %s831_s13   ;;  %s600_s12 = sphi %s641_s12, %s830_s12  }
   0x7   : > { %p40_p0 = scmp.ne.s32.totalorder %s604_s13, %s600_s12  ;;  %p812_p1 = scmp.eq.s32.totalorder %s662_s16, 0 }
   0x8   : > { %p112_p3 = scmp.eq.s32.totalorder %s392_s17, 1  ;;  %p393_p5 = scmp.ge.s32.totalorder %s612_s15, 1 }
   0x9   : > { %p671_p4 = por %p812_p1, %p40_p0  ;;  %p119_p7 = scmp.lt.s32.totalorder %s612_s15, 3 }
   0xa   : > { %p676_p6 = por %p112_p3, %p40_p0  ;;  %s614_s21 = smov [#allocation5]  }
   0xb   : > { %s816_s18 = scalar_select %p671_p4, 1, 0 }
   0xc   : > { %s817_s19 = scalar_select %p676_p6, 1, 0 }
   0xd   : > { %p681_p8 = pnand %p393_p5, %p119_p7  ;;  %s131_s22 = sshll.u32 %s614_s21, 4  ;;  %s132_s22 = int_to_ptr.vmem [resolvable:$true] %s131_s22 }
   0xe   : > { %s695_s24 = sadd.s32 1, %s612_s15   ;;  %s27_s25 = sadd.s32 1, %s608_s14 }
   0xf   : > { %s818_s20 = scalar_select %p681_p8, 1, 0 }
  0x10   : > { %p433_p9 = pneg %p681_p8  ;;  %s24_s26 = ssub.s32 %s612_s15, %s695_s24 }
  0x11   : > { %s501_s27 = scalar_lea.vmem %s132_s22, 512  ;;  %p509_p5 = scmp.lt.s32.totalorder %s132_s22, %s132_s22 }
  0x12   : > { %p690_p11 = pnand %p433_p9, %p812_p1  ;;  %p502_p13 = scmp.ne.s32.totalorder %s132_s22, %s501_s27 }
  0x13   : > { %p510_p7 = scmp.lt.s32.totalorder %s501_s27, %s501_s27 }
  0x14   : > { %p492_p12 = pneg %p690_p11 }
  0x15   : > { %p511_p10 = por %p510_p7, %p509_p5 }
  0x16   : > { %p504_p0 = pnand %p502_p13, %p492_p12 }
  0x18   : > { %p505_p3 = pneg %p504_p0 }
  0x1a   : > { %p512_p2 = pnand %p511_p10, %p505_p3 }
  0x1c   : > { %515 = shalt.err (!%p512_p2)
}
  0x1d   : > { %s615_s28 = smov 128   ;;  %s616_s29 = smov 8  }
  0x1e   : > { %436 = dma.hbm_to_vmem [thread:$0]  (!%p690_p11), %s809_s1, 512, %s132_s22, [#allocation6], %s615_s28, %s615_s28, %s616_s29  }
  0x1f   : > { %p25_p9 = scmp.eq.s32.totalorder %s24_s26, 0  ;;  %p34_p12 = scmp.ne.s32.totalorder %s608_s14, %s604_s13 }
  0x20   : > { %p35_p10 = scmp.eq.s32.totalorder %s612_s15, 0  ;;  %p446_p2 = scmp.lt.s32.totalorder %s612_s15, 2 }
  0x21   : > { %s712_s5 = scalar_select %p25_p9, %s608_s14, %s27_s25  }
  0x22   : > { %p36_p13 = por %p35_p10, %p34_p12  ;;  %p820_p0 = scmp.eq.s32.totalorder %s662_s16, 1 }
  0x23   : > { %s148_s7 = sand.u32 1, %s608_s14   ;;  %s397_s8 = sshll.u32 %s612_s15, 7 }
  0x24   : > { %p716_p3 = por %p820_p0, %p34_p12  ;;  %s396_s9 = sshll.u32 %s148_s7, 3 }
  0x25   : > { %s725_s17 = scalar_lea.hbm %s808_s0, %s397_s8  ;;  %s152_s21 = scalar_lea.vmem [#allocation2], %s396_s9 }
  0x26   : > { %s821_s6 = scalar_select %p716_p3, 1, 0 }
  0x27   : > { %s159_s22 = sshll.u32 %s152_s21, 4  ;;  %p727_p11 = pnand %p446_p2, %p36_p13  ;;  %s160_s22 = int_to_ptr.vmem [resolvable:$true] %s159_s22 }
  0x28   : > { %s149_s25 = scalar_lea.sflag [#allocation3], %s148_s7  ;;  %s516_s26 = scalar_lea.hbm %s725_s17, 128 }
  0x29   : > { %p517_p5 = scmp.ne.s32.totalorder %s725_s17, %s516_s26  ;;  %p518_p7 = pneg %p727_p11 }
  0x2a   : > { %s521_s29 = scalar_lea.hbm %s808_s0, 256  ;;  %p522_p10 = scmp.lt.s32.totalorder %s725_s17, %s808_s0 }
  0x2b   : > { %p519_p9 = pnand %p518_p7, %p517_p5  ;;  %p523_p2 = scmp.lt.s32.totalorder %s521_s29, %s516_s26 }
  0x2d   : > { %p520_p12 = pneg %p519_p9  ;;  %p524_p13 = por %p523_p2, %p522_p10 }
  0x2f   : > { %p525_p0 = pnand %p524_p13, %p520_p12 }
  0x31   : > { %528 = shalt.err (!%p525_p0)
}
  0x32   : > { %s529_s8 = scalar_lea.vmem %s160_s22, 128  ;;  %s617_s7 = smov [#allocation2]  }
  0x33   : > { %p530_p1 = scmp.ne.s32.totalorder %s160_s22, %s529_s8  ;;  %s534_s9 = sshll.u32 %s617_s7, 4  ;;  %s535_s9 = int_to_ptr.vmem [resolvable:$false] %s534_s9 }
  0x34   : > { %s536_s10 = scalar_lea.vmem %s535_s9, 256  ;;  %p537_p5 = scmp.lt.s32.totalorder %s160_s22, %s535_s9 }
  0x35   : > { %p532_p6 = pnand %p530_p1, %p518_p7  ;;  %p538_p9 = scmp.lt.s32.totalorder %s536_s10, %s529_s8 }
  0x37   : > { %p533_p3 = pneg %p532_p6  ;;  %p539_p4 = por %p538_p9, %p537_p5 }
  0x39   : > { %p540_p8 = pnand %p539_p4, %p533_p3 }
  0x3b   : > { %543 = shalt.err (!%p540_p8)
}
  0x3c   : > { %440 = dma.hbm_to_vmem [thread:$0]  (!%p727_p11), %s725_s17, 128, %s160_s22, %s149_s25  }
  0x3d   : > { %p823_p12 = scmp.ne.s32.totalorder %s818_s20, 0 }
  0x3e   : > { %s748_s11 = sand.u32 (!%p823_p12), 1, %s604_s13   ;;  %p824_p1 = scmp.ne.s32.totalorder (!%p823_p12), %s816_s18, 0 }
  0x3f   : > { %168 = sbr.rel (%p823_p12) target bundleno = 461 (0x1cd), region = 32  ;;  %s399_s21 = sshll.u32 (!%p823_p12), %s748_s11, 3 }
  0x40   : > { %s171_s26 = scalar_lea.sflag (!%p823_p12), [#allocation3], %s748_s11  ;;  %s174_s27 = scalar_lea.vmem (!%p823_p12), [#allocation2], %s399_s21 }
  0x44   : > { %587 = dma.done.wait (%p824_p1), %s171_s26, 128  }
  0x45   : > { %589 = vsyncadd (%p824_p1), %s171_s26, 4294967168  ;;  %p825_p4 = scmp.eq.s32.totalorder %s662_s16, 0 }
  0x47   : > { %591 = dma.done.wait (%p825_p4), [#allocation6], 512   ;;  %p826_p6 = pmov %p825_p4 }
  0x48   : > { %v618_v0 = vmov 0.0   ;;  %vm619_vm0 = vmmov 0   ;;  %v205_v1 = vld [vmem:[#allocation5 + $0x18] sm:$0xff]  ;;  %v204_v2 = vld [vmem:[#allocation5 + $0x10] sm:$0xff]  ;;  %v203_v3 = vld [vmem:[#allocation5 + $0x8] sm:$0xff]  ;;  %vm206_vm1 = vcmask 261120  }
  0x49   : > { %593 = vsyncadd (%p826_p6), [#allocation6], 4294966784  ;;  %414 = vmatprep.subr.mxu0 %v618_v0  ;;  %422 = vmatprep.mubr.msk.f32.mxu0 %vm619_vm0, %v618_v0  ;;  %v202_v4 = vld [vmem:[#allocation5] sm:$0xff]  ;;  %v201_v5 = vld [vmem:[%s174_s27] sm:$0xff]  ;;  %s406_s17 = sshll.u32 %s662_s16, 7  ;;  %s200_s22 = scalar_lea.vmem [#allocation7], %s399_s21 }
  0x4a   : > { %415 = vmatpush3.msra.mxu0 %v205_v1  ;;  %v403_v7 = vld [vmem:[%s810_s2] ss:$0 sm:$0xff]  ;;  %s312_s23 = sshll.u32 %s200_s22, 4  ;;  %s771_s29 = scalar_lea.hbm %s811_s3, %s406_s17  ;;  %s313_s23 = int_to_ptr.vmem [resolvable:$true] %s312_s23 }
  0x4b   : > { %416 = vmatprep.subr.mxu0 %v618_v0  ;;  %s299_s30 = scalar_lea.sflag [#allocation4], %s748_s11  ;;  %s544_s4 = scalar_lea.vmem %s313_s23, 128 }
  0x4c   : > { %417 = vmatpush3.msra.mxu0 %v204_v2  ;;  %p545_p8 = scmp.ne.s32.totalorder %s313_s23, %s544_s4  ;;  %p827_p3 = scmp.ne.s32.totalorder %s821_s6, 0 }
  0x4d   : > { %418 = vmatprep.subr.mxu0 %v618_v0  ;;  %s620_s8 = smov [#allocation7]  }
  0x4e   : > { %419 = vmatpush3.msra.mxu0 %v203_v3  ;;  %p546_p11 = pnand %p545_p8, %p827_p3  ;;  %s548_s7 = sshll.u32 %s620_s8, 4  ;;  %s549_s7 = int_to_ptr.vmem [resolvable:$false] %s548_s7 }
  0x4f   : > { %420 = vmatprep.subr.mxu0 %v618_v0  ;;  %s550_s16 = scalar_lea.vmem %s549_s7, 256  ;;  %p551_p10 = scmp.lt.s32.totalorder %s313_s23, %s549_s7 }
  0x50   : > { %421 = vmatpush3.msra.mxu0 %v202_v4  ;;  %p547_p7 = pneg %p546_p11  ;;  %p552_p2 = scmp.lt.s32.totalorder %s550_s16, %s544_s4 }
  0x51   : > { %423 = vmatmul.mubr.msk.f32.vlgmr.msra.gmra.mxu0 %vm206_vm1, %v201_v5 }
  0x52   : > { %p553_p13 = por %p552_p2, %p551_p10 }
  0x54   : > { %p554_p0 = pnand %p553_p13, %p547_p7 }
 0x111   : > { %v276_v6 = vpop.f32.mrf.mxu0 }
 0x112   : > { %v280_v8 = vmax.f32 %v276_v6, 0.0 }
 0x113   : > { %v424_v9 = vpop.f32.mrf.mxu0 }
 0x114   : > { %v288_v10 = vmul.f32 %v403_v7, %v280_v8 }
 0x116   : > { %289 = vadd.xlane.f32.xlu0 %v288_v10 }
 0x19f   : > { %v290_v11 = vpop.xlane.xlu0 %289 }
 0x1a0   : > { %v404_v12 = vmul.f32 -1.442695, %v290_v11 }
 0x1a2   : > { %486 = vpow2.f32 %v404_v12 }
 0x1af   : > { %v487_v13 = vpop.eup %486 }
 0x1b0   : > { %v294_v14 = vadd.f32 1.0, %v487_v13 }
 0x1b2   : > { %488 = vrcp.f32 %v294_v14 }
 0x1bf   : > { %v489_v15 = vpop.eup %488 }
 0x1c0   : > { %297 = vst [vmem:[%s200_s22] sm:$0xff] %v489_v15 }
 0x1c1   : > { %557 = shalt.err (!%p554_p0)
}
 0x1c2   : > { %s558_s9 = scalar_lea.hbm %s771_s29, 128  ;;  %s562_s21 = scalar_lea.hbm %s811_s3, 256 }
 0x1c3   : > { %p559_p5 = scmp.ne.s32.totalorder %s771_s29, %s558_s9  ;;  %p563_p1 = scmp.lt.s32.totalorder %s771_s29, %s811_s3 }
 0x1c4   : > { %p564_p4 = scmp.lt.s32.totalorder %s562_s21, %s558_s9 }
 0x1c5   : > { %p560_p9 = pnand %p559_p5, %p827_p3 }
 0x1c6   : > { %p565_p6 = por %p564_p4, %p563_p1 }
 0x1c7   : > { %p561_p12 = pneg %p560_p9 }
 0x1c9   : > { %p566_p8 = pnand %p565_p6, %p561_p12 }
 0x1cb   : > { %569 = shalt.err (!%p566_p8)
}
 0x1cc   : > { %431 = dma.vmem_to_hbm [thread:$0]  (%p827_p3), %s313_s23, 128, %s771_s29, %s299_s30  }
 0x1cd PF: > { %s324_s18 = sand.u32 1, %s600_s12   ;;  %p828_p11 = scmp.ne.s32.totalorder %s817_s19, 0 }
 0x1ce   : > { %p829_p7 = scmp.ge.s32.totalorder %s612_s15, 2  ;;  %s325_s20 = scalar_lea.sflag [#allocation4], %s324_s18 }
 0x1d0   : > { %p442_p10 = pnand %p829_p7, %p828_p11 }
 0x1d2   : > { %p443_p2 = pneg %p442_p10 }
 0x1d4   : > { %595 = dma.done.wait (%p443_p2), %s325_s20, 128  }
 0x1d5   : > { %597 = vsyncadd (%p443_p2), %s325_s20, 4294967168  ;;  %p17_p13 = scmp.ge.s32.totalorder %s695_s24, 4   ;;  %s830_s12 = smov %s604_s13 }
 0x1d6   : > { %s831_s13 = smov %s608_s14  ;;  %s832_s14 = smov %s712_s5 }
 0x1d7   : > { %s833_s15 = smov %s695_s24  ;;  %19 = sbr.rel (!%p17_p13) target bundleno = 6 (0x6), region = 81 }
 0x1dc   :  { %330 = vsyncpa [#allocation3], 1 }
 0x1dd   :  { %332 = vsyncpa [#allocation3 + $0x1], 1 }
 0x1de   :  { %333 = vsyncpa [#allocation6], 1 }
 0x1df   :  { %334 = vsyncpa [#allocation4], 1 }
 0x1e0   :  { %336 = vsyncpa [#allocation4 + $0x1], 1 }

</bundles_post_ra>
